<compile_context>
chip_gen: v7x
topology: tpu7x:2x2x1
jax: 0.10.0
libtpu: 0.0.40
codegen_flags: <defaults>
</compile_context>

<pallas_src>
import numpy as np

import jax
import jax.numpy as jnp
from jax.experimental import pallas as pl
from jax.experimental.pallas import tpu as pltpu


# ----------------------------------------------------------------------------
# pltpu.roll direction probe (cached). pltpu.roll is documented to match
# jnp.roll; we verify once so the tap <-> (weight, mask) pairing is robust
# to the rotate-direction convention either way.
# ----------------------------------------------------------------------------
_ROLL_MATCHES_JNP = None


def _roll_matches_jnp():
    global _ROLL_MATCHES_JNP
    if _ROLL_MATCHES_JNP is None:
        def probe(x_ref, o_ref):
            o_ref[...] = pltpu.roll(x_ref[...], 1, axis=1)

        x = jnp.broadcast_to(jnp.arange(128, dtype=jnp.float32), (8, 128))
        y = pl.pallas_call(
            probe, out_shape=jax.ShapeDtypeStruct((8, 128), jnp.float32))(x)
        # jnp.roll semantics: row becomes [127, 0, 1, ...] -> y[0, 0] == 127.
        _ROLL_MATCHES_JNP = bool(float(y[0, 0]) == 127.0)
    return _ROLL_MATCHES_JNP


# ----------------------------------------------------------------------------
# Fused kernel: convrelu -> resblock (conv+PReLU, conv, +skip) -> pif conv.
# One grid step = one image. Activations are (Cp, H*W) f32 values; the im2col
# scratch is (9*Cp, H*W) bf16 and is fully rewritten by every layer.
# ----------------------------------------------------------------------------
def _make_kernel(C, Cp, H, W):
    HW = H * W
    taps = tuple((kh - 1, kw - 1) for kh in range(3) for kw in range(3))

    def kernel(x_ref, masks_ref,
               cr_w, cr_b, cr_a,
               rb1_w, rb1_b, rb1_a,
               rb2_w, rb2_b,
               pif_w, pif_b,
               out_ref, col_ref):
        masks = masks_ref[...]                       # (9, HW) f32, reused by all convs

        def conv3x3(act, w_ref, b_ref, a_ref=None):
            # act: (Cp, HW) f32 (padded channel rows are zero).
            # Build the (9*Cp, HW) bf16 im2col with lane rolls (XLU) + boundary
            # masks: lane-dense, aligned stores, no spatial padding buffer.
            for t, (dh, dw) in enumerate(taps):
                s = dh * W + dw
                if s == 0:
                    tap = act
                else:
                    tap = pltpu.roll(act, (-s) % HW, axis=1) * masks[t:t + 1, :]
                col_ref[t * Cp:(t + 1) * Cp, :] = tap.astype(jnp.bfloat16)
            # Single K = 9*Cp MXU matmul per layer; (Cout, HW) keeps M on lanes.
            acc = jnp.dot(w_ref[...], col_ref[...],
                          preferred_element_type=jnp.float32)
            acc = acc + b_ref[...]                   # (Cout, 1) broadcast, f32
            if a_ref is not None:                    # per-channel PReLU in f32
                acc = jnp.where(acc >= 0.0, acc, acc * a_ref[...])
            return acc                               # (Cout, HW) f32

        x = x_ref[0]                                 # (Cp, HW) f32

        x0 = conv3x3(x, cr_w, cr_b, cr_a)            # convrelu
        # TODO(synk): Cascade_resnet_blocks source was not provided; modeled as the
        # standard n_blocks=1 residual block  x + conv(PReLU(conv(x))).
        r1 = conv3x3(x0, rb1_w, rb1_b, rb1_a)
        r2 = conv3x3(r1, rb2_w, rb2_b)
        x_hidd = x0 + r2
        img_flow = conv3x3(x_hidd, pif_w, pif_b)     # (5, HW)

        # One lane-dense (C+5, HW) output slab per image; sliced in the wrapper.
        out_ref[0, :C, :] = x_hidd[:C, :]
        out_ref[0, C:, :] = img_flow

    return kernel


# ----------------------------------------------------------------------------
# Host-side packing helpers.
# ----------------------------------------------------------------------------
def _tap_masks(H, W, mirror):
    """(9, H*W) f32 validity masks for the 3x3 taps on the flattened image."""
    hh, ww = np.meshgrid(np.arange(H), np.arange(W), indexing="ij")
    rows = []
    for kh in range(3):
        for kw in range(3):
            dh, dw = kh - 1, kw - 1
            if mirror:
                dh, dw = -dh, -dw
            ok = ((hh + dh >= 0) & (hh + dh < H) &
                  (ww + dw >= 0) & (ww + dw < W))
            rows.append(ok.reshape(H * W))
    return jnp.asarray(np.stack(rows, axis=0).astype(np.float32))


def _pack_w(w, cout_pad, cin_pad, mirror):
    """torch Conv2d weight (Cout, Cin, 3, 3) -> (cout_pad, 9*cin_pad) bf16,
    tap-major (kh, kw) with cin innermost, matching the kernel's im2col rows."""
    if mirror:
        w = w[:, :, ::-1, ::-1]
    cout, cin = w.shape[0], w.shape[1]
    w = jnp.pad(w, ((0, cout_pad - cout), (0, cin_pad - cin), (0, 0), (0, 0)))
    w = jnp.transpose(w, (0, 2, 3, 1)).reshape(cout_pad, 9 * cin_pad)
    return w.astype(jnp.bfloat16)


def _pack_vec(v, rows):
    """(Cout,) bias / PReLU alpha -> zero-padded (rows, 1) f32 column."""
    v = jnp.asarray(v, jnp.float32).reshape(-1)
    v = jnp.pad(v, (0, rows - v.shape[0]))
    return v.reshape(rows, 1)


# ----------------------------------------------------------------------------
# Wrapper (NCHW in / NCHW out), matches STIRDecorder_top_level.forward.
# ----------------------------------------------------------------------------
def stir_decoder_top_forward(params, c_cat):
    B, C, H, W = c_cat.shape
    HW = H * W
    Cp = ((C + 15) // 16) * 16          # channel pad -> aligned bf16 im2col tiles
    mirror = not _roll_matches_jnp()

    # NCHW -> (B, C, H*W) is a pure reshape (channels already major), then pad rows.
    x = c_cat.reshape(B, C, HW).astype(jnp.float32)
    if Cp != C:
        x = jnp.pad(x, ((0, 0), (0, Cp - C), (0, 0)))

    masks = _tap_masks(H, W, mirror)

    args = (
        x, masks,
        _pack_w(params["cr_w"], Cp, Cp, mirror),
        _pack_vec(params["cr_b"], Cp), _pack_vec(params["cr_a"], Cp),
        _pack_w(params["rb1_w"], Cp, Cp, mirror),
        _pack_vec(params["rb1_b"], Cp), _pack_vec(params["rb1_a"], Cp),
        _pack_w(params["rb2_w"], Cp, Cp, mirror),
        _pack_vec(params["rb2_b"], Cp),
        _pack_w(params["pif_w"], 5, Cp, mirror),
        _pack_vec(params["pif_b"], 5),
    )

    def const_spec(a):
        zeros = (0,) * a.ndim            # same (small) block for every grid step
        return pl.BlockSpec(a.shape, lambda b: zeros)

    in_specs = [pl.BlockSpec((1, Cp, HW), lambda b: (b, 0, 0))]
    in_specs += [const_spec(a) for a in args[1:]]

    out = pl.pallas_call(
        _make_kernel(C, Cp, H, W),
        grid=(B,),                                       # one image per grid step
        in_specs=in_specs,
        out_specs=pl.BlockSpec((1, C + 5, HW), lambda b: (b, 0, 0)),
        out_shape=jax.ShapeDtypeStruct((B, C + 5, HW), jnp.float32),
        scratch_shapes=[pltpu.VMEM((9 * Cp, HW), jnp.bfloat16)],   # im2col, reused
        compiler_params=pltpu.CompilerParams(
            dimension_semantics=("parallel",),           # both v7x TCs + DMA pipelining
            vmem_limit_bytes=32 * 1024 * 1024),          # >= v5e's 16 MiB scoped default
    )(*args)

    out = out.reshape(B, C + 5, H, W)                    # pure reshape, stays NCHW
    x_hidd = out[:, :C]
    flow_0 = out[:, C:C + 2]
    flow_1 = out[:, C + 2:C + 4]
    img_pred = out[:, C + 4:C + 5]
    return img_pred, x_hidd, flow_0, flow_1


# ----------------------------------------------------------------------------
# Pure-JAX reference with the SAME bf16-operand / f32-accumulation quantization
# (validates shifts, masks, tap->weight packing, PReLU, residual).
# ----------------------------------------------------------------------------
def _conv3x3_ref(x, w, b):
    y = jax.lax.conv_general_dilated(
        x.astype(jnp.bfloat16), w.astype(jnp.bfloat16),
        window_strides=(1, 1), padding=((1, 1), (1, 1)),
        dimension_numbers=("NCHW", "OIHW", "NCHW"),
        preferred_element_type=jnp.float32)
    return y + b.reshape(1, -1, 1, 1)


def _prelu_ref(x, a):
    return jnp.where(x >= 0.0, x, x * a.reshape(1, -1, 1, 1))


def reference_forward(params, c_cat):
    x = c_cat.astype(jnp.float32)
    x0 = _prelu_ref(_conv3x3_ref(x, params["cr_w"], params["cr_b"]), params["cr_a"])
    r1 = _prelu_ref(_conv3x3_ref(x0, params["rb1_w"], params["rb1_b"]), params["rb1_a"])
    r2 = _conv3x3_ref(r1, params["rb2_w"], params["rb2_b"])
    x_hidd = x0 + r2
    img_flow = _conv3x3_ref(x_hidd, params["pif_w"], params["pif_b"])
    return img_flow[:, 4:5], x_hidd, img_flow[:, :2], img_flow[:, 2:4]


# ----------------------------------------------------------------------------
# Parameters (deterministic synthetic init, PyTorch layouts; PReLU alpha = 0.25).
# ----------------------------------------------------------------------------
def init_params(key, in_chs):
    C = in_chs * 3
    ks = jax.random.split(key, 8)

    def w(k, cout, cin, scale=0.1):
        return scale * jax.random.normal(k, (cout, cin, 3, 3), jnp.float32)

    def b(k, cout):
        return 0.01 * jax.random.normal(k, (cout,), jnp.float32)

    return {
        "cr_w": w(ks[0], C, C), "cr_b": b(ks[1], C),
        "cr_a": jnp.full((C,), 0.25, jnp.float32),
        "rb1_w": w(ks[2], C, C), "rb1_b": b(ks[3], C),
        "rb1_a": jnp.full((C,), 0.25, jnp.float32),
        "rb2_w": w(ks[4], C, C), "rb2_b": b(ks[5], C),
        "pif_w": w(ks[6], 5, C), "pif_b": b(ks[7], 5),
    }


if __name__ == "__main__":
    B, H, W = 2, 16, 16
    in_chs, hidd_chs = 4, 32           # hidd_chs is unused by the top-level forward

    key = jax.random.PRNGKey(0)
    kp, kx = jax.random.split(key)
    params = init_params(kp, in_chs)
    c_cat = jax.random.normal(kx, (B, in_chs * 3, H, W), jnp.float32)

    _roll_matches_jnp()                 # resolve the rotate convention once, eagerly

    fwd = jax.jit(stir_decoder_top_forward)
    img_pred, x_hidd, flow_0, flow_1 = fwd(params, c_cat)
    jax.block_until_ready((img_pred, x_hidd, flow_0, flow_1))

    assert img_pred.shape == (B, 1, H, W), img_pred.shape
    assert x_hidd.shape == (B, in_chs * 3, H, W), x_hidd.shape
    assert flow_0.shape == (B, 2, H, W), flow_0.shape
    assert flow_1.shape == (B, 2, H, W), flow_1.shape

    # Numerical check vs. a pure-JAX reference with matched bf16/f32 quantization.
    ref = reference_forward(params, c_cat)
    for got, want in zip((img_pred, x_hidd, flow_0, flow_1), ref):
        np.testing.assert_allclose(np.asarray(got), np.asarray(want),
                                   rtol=5e-3, atol=5e-3)

    print("KERNEL_OK")
</pallas_src>

<mosaic_0001>
module attributes {stable_mosaic.version = 11 : i64} {
  func.func @probe(%arg0: memref<8x128xf32, #tpu.memory_space<vmem>>, %arg1: memref<8x128xf32, #tpu.memory_space<vmem>>) attributes {dimension_semantics = [], scalar_prefetch = 0 : i64, scratch_operands = 0 : i64, tpu.core_type = #tpu.core_type<tc>} {
    %c0 = arith.constant 0 : index
    %c0_0 = arith.constant 0 : index
    %0 = vector.load %arg0[%c0, %c0_0] : memref<8x128xf32, #tpu.memory_space<vmem>>, vector<8x128xf32>
    %c1_i32 = arith.constant 1 : i32
    %1 = tpu.dynamic_rotate %0 by %c1_i32 dim 1 : vector<8x128xf32>, i32 -> vector<8x128xf32>
    %c0_1 = arith.constant 0 : index
    %c0_2 = arith.constant 0 : index
    %2 = vector.load %arg1[%c0_1, %c0_2] : memref<8x128xf32, #tpu.memory_space<vmem>>, vector<8x128xf32>
    tpu.vector_store %arg1[%c0_1, %c0_2], %1 {strides = array<i32>} : memref<8x128xf32, #tpu.memory_space<vmem>>, vector<8x128xf32>,
    return
  }
}

</mosaic_0001>

<bundles_post_ra>
// kernel: tpu_custom_call.1
= control target key start
LH: loop header
LB: loop body
LE: loop exit
PB: predicated region body
PF: predicated region fallthrough
CT: control target
= control target key end

     0   :  { %6 = vsyncpa [#allocation3], 0  ;;  %s128_s0 = inlined_call_operand.hbm [shape: f32[8,128], index: 0, kind: input, shape index: {}]   ;;  %s129_s1 = inlined_call_operand.hbm [shape: f32[8,128], index: 1, kind: output, shape index: {}]  }
   0x1   :  { %7 = vsyncpa [#allocation4], 0  ;;  %s91_s6 = smov [#allocation2]   ;;  %s43_s10 = scalar_lea.hbm %s128_s0, 128 }
   0x2   :  { %s14_s7 = sshll.u32 %s91_s6, 4  ;;  %p44_p0 = scmp.ne.s32.totalorder %s128_s0, %s43_s10  ;;  %s15_s7 = int_to_ptr.vmem [resolvable:$true] %s14_s7 }
   0x3   :  { %p47_p1 = scmp.lt.u32.totalorder %s43_s10, %s128_s0 }
   0x5   :  { %p49_p2 = pnand %p47_p1, %p44_p0 }
   0x7   :  { %52 = shalt.err (!%p49_p2)
}
   0x8   :  { %s53_s15 = scalar_lea.vmem %s15_s7, 128  ;;  %p58_p4 = scmp.lt.s32.totalorder %s15_s7, %s15_s7 }
   0x9   :  { %p54_p3 = scmp.ne.s32.totalorder %s15_s7, %s53_s15  ;;  %p59_p5 = scmp.lt.s32.totalorder %s53_s15, %s53_s15 }
   0xb   :  { %p60_p6 = por %p59_p5, %p58_p4 }
   0xd   :  { %p61_p7 = pnand %p60_p6, %p54_p3 }
   0xf   :  { %64 = shalt.err (!%p61_p7)
}
  0x10   :  { %17 = dma.hbm_to_vmem [thread:$0]  %s128_s0, 128, %s15_s7, [#allocation3]  }
  0x11   :  { %87 = dma.done.wait [#allocation3], 128  }
  0x12   :  { %88 = vsyncadd [#allocation3], 4294967168  ;;  %v21_v0 = vld [vmem:[#allocation2] sm:$0xff]  ;;  %s92_s18 = smov 1   ;;  %s93_s19 = smov [#allocation5]  }
  0x13   :  { %22 = vrot.lane.b32.xlu0 %v21_v0, %s92_s18  ;;  %s31_s20 = sshll.u32 %s93_s19, 4  ;;  %s32_s20 = int_to_ptr.vmem [resolvable:$true] %s31_s20 }
  0x14   :  { %s65_s21 = scalar_lea.vmem %s32_s20, 128  ;;  %p70_p9 = scmp.lt.s32.totalorder %s32_s20, %s32_s20 }
  0x15   :  { %p66_p8 = scmp.ne.s32.totalorder %s32_s20, %s65_s21  ;;  %p71_p10 = scmp.lt.s32.totalorder %s65_s21, %s65_s21 }
  0x17   :  { %p72_p11 = por %p71_p10, %p70_p9 }
  0x19   :  { %p73_p12 = pnand %p72_p11, %p66_p8 }
  0x85   :  { %v23_v1 = vpop.permute.xlu0 %22 }
  0x86   :  { %24 = vst [vmem:[#allocation5] sm:$0xff] %v23_v1 }
  0x87   :  { %76 = shalt.err (!%p73_p12)
}
  0x88   :  { %s77_s0 = scalar_lea.hbm %s129_s1, 128 }
  0x89   :  { %p78_p13 = scmp.ne.s32.totalorder %s129_s1, %s77_s0  ;;  %p81_p0 = scmp.lt.u32.totalorder %s77_s0, %s129_s1 }
  0x8b   :  { %p83_p1 = pnand %p81_p0, %p78_p13 }
  0x8d   :  { %86 = shalt.err (!%p83_p1)
}
  0x8e   :  { %34 = dma.vmem_to_hbm [thread:$0]  %s32_s20, 128, %s129_s1, [#allocation4]  }
  0x8f   :  { %89 = dma.done.wait [#allocation4], 128  }
  0x90   :  { %90 = vsyncadd [#allocation4], 4294967168 }
  0x91   :  { %38 = vsyncpa [#allocation3], 1 }
  0x92   :  { %39 = vsyncpa [#allocation4], 1 }

</bundles_post_ra>
